<compile_context>
chip_gen: v7x
topology: tpu7x:2x2x1
jax: 0.10.0
libtpu: 0.0.40
codegen_flags: <defaults>
</compile_context>

<pallas_src>
import math
import functools

import numpy as np
import jax
import jax.numpy as jnp
from jax.experimental import pallas as pl
from jax.experimental.pallas import tpu as pltpu


# ---------------------------------------------------------------------------
# Kernel
# ---------------------------------------------------------------------------
def _fused_upconv_kernel(x_ref, csel_ref, acat_ref, bias_ref, o_ref, s_ref):
    """One (batch-block, Ht-tile) grid step.

    x_ref    : (TB*Cin*H, W)        original-res inputs of the TB-image batch block,
                                    (batch, channel, row) stacked on the sublane axis.
    csel_ref : (K, W, Wt)           column selection (nearest x2 upsample + center crop
                                    + 'same' zero pad + tap shift along W), 0/1 entries.
    acat_ref : (Tt*Cout, K*Cin*H)   row selection with the conv weights folded in;
                                    rows ordered (y, cout), cols ordered (tap, cin, row).
    bias_ref : (Tt*Cout, 1)         bias[cout] repeated per output row.
    o_ref    : (Tt*Cout, TB*Wt)     lane-dense output block, columns ordered (b, xq).
    s_ref    : (K*Cin*H, TB*Wt)     VMEM scratch holding the tap-expanded column-selected
                                    inputs; computed once per batch block, reused by all
                                    Ht tiles of that block.
    """
    K, W, Wt = csel_ref.shape
    tb = o_ref.shape[1] // Wt
    cin_h = x_ref.shape[0] // tb

    # ---- Stage 1 (once per batch block): column-selection taps -----------------------
    # Batched over the TB images on the sublane axis (M = TB*Cin*H), then scattered onto
    # the lane axis of the scratch so stage 2 sees a single lane-dense right operand.
    @pl.when(pl.program_id(1) == 0)
    def _stage1():
        x_all = x_ref[...]                                        # (TB*Cin*H, W)
        for j in range(K):                                        # unrolled (K = 3)
            yj = jnp.dot(x_all, csel_ref[j],
                         preferred_element_type=jnp.float32)      # (TB*Cin*H, Wt)
            yj = yj.astype(s_ref.dtype)
            for b in range(tb):                                   # unrolled
                s_ref[j * cin_h:(j + 1) * cin_h, b * Wt:(b + 1) * Wt] = (
                    yj[b * cin_h:(b + 1) * cin_h, :])

    # ---- Stage 2: one deep contraction (K*Cin*H) at lane-dense width TB*Wt ------------
    # Bias is fused into the single store: no zero-init accumulator, one vst of the block.
    o_ref[...] = (jnp.dot(acat_ref[...], s_ref[...],
                          preferred_element_type=jnp.float32)
                  + bias_ref[...]).astype(o_ref.dtype)


# ---------------------------------------------------------------------------
# Trace-time helpers (pure Python / numpy)
# ---------------------------------------------------------------------------
def _selection_matrices(H, W, Ht, Wt, K):
    """Constant 0/1 matrices implementing nearest-x2 upsample + floor-div center crop
    + 'same' zero padding + per-tap shift:  shifted_plane(i, j) = R[i] @ x_plane @ C[j]."""
    pad = (K - 1) // 2
    dh = (2 * H - Ht) // 2            # crop offsets (floor div, matches crop_layer)
    dw = (2 * W - Wt) // 2
    R = np.zeros((K, Ht, H), np.float32)
    for i in range(K):
        for y in range(Ht):
            p = y + i - pad                      # row in cropped-upsampled coordinates
            if 0 <= p < Ht:                      # outside -> conv zero padding
                R[i, y, (p + dh) // 2] = 1.0     # nearest-neighbor source row
    C = np.zeros((K, W, Wt), np.float32)
    for j in range(K):
        for xq in range(Wt):
            q = xq + j - pad
            if 0 <= q < Wt:
                C[j, (q + dw) // 2, xq] = 1.0
    return R, C


def _choose_batch_block(B, Wt):
    """Batch images folded per grid step (and onto the output lane axis).

    Targets TB*Wt >= 128 lanes (unmasked, dense vst and a filled MXU N dimension);
    among dense choices prefers the smallest TB that still leaves >= 2 grid steps so
    v7x's two TensorCores both get work via the 'parallel' batch axis."""
    divisors = [d for d in range(1, B + 1) if B % d == 0]
    dense = [d for d in divisors if d * Wt >= 128]
    if dense:
        multi_step = [d for d in dense if B // d >= 2]
        return min(multi_step) if multi_step else min(dense)
    return max(divisors)      # cannot reach 128 lanes: maximize lane fill / fewest steps


def _choose_ht_tile(Ht, Cout, K, Cin, H, elem_bytes, budget_bytes=8 << 20):
    """Largest Ht tile whose weight-folded A slab (tile*Cout, K*Cin*H) fits a conservative
    per-buffer VMEM budget (the pipeline double-buffers it).  Bounds residency for v7x's
    64 MiB physical / 32 MiB default-scoped VMEM; trivially the whole Ht at test scale."""
    for d in sorted((d for d in range(1, Ht + 1) if Ht % d == 0), reverse=True):
        if (d * Cout) % 8 == 0 and d * Cout * K * Cin * H * elem_bytes <= budget_bytes:
            return d
    return Ht   # no clean tiling found: keep A fully resident (block == full array)


# ---------------------------------------------------------------------------
# Wrapper
# ---------------------------------------------------------------------------
@functools.partial(
    jax.jit, static_argnames=("size", "batch_block", "ht_tile", "operand_dtype"))
def upsample_conv_forward(x_nchw, weight_oikk, bias, *, size,
                          batch_block=None, ht_tile=None, operand_dtype=jnp.float32):
    """Full Upsample_conv forward.  x_nchw: (B, Cin, H, W); weight: (Cout, Cin, K, K);
    bias: (Cout,); size: static (Ht, Wt).  Returns (B, Cout, Ht, Wt) in NCHW."""
    B, Cin, H, W = x_nchw.shape
    Cout, Cin_w, K, K2 = weight_oikk.shape
    Ht, Wt = int(size[0]), int(size[1])
    assert Cin_w == Cin and K2 == K
    assert K % 2 == 1, "even filter_size diverges from Conv2d(padding=(K-1)//2) semantics"
    assert Ht <= 2 * H and Wt <= 2 * W, "crop target must fit inside the 2x-upsampled map"
    assert (Cin * H) % 8 == 0, "Cin*H must be a multiple of 8 (sublane tiling)"

    tb = _choose_batch_block(B, Wt) if batch_block is None else int(batch_block)
    assert B % tb == 0
    n_bblk = B // tb

    elem_bytes = jnp.dtype(operand_dtype).itemsize
    tt = (_choose_ht_tile(Ht, Cout, K, Cin, H, elem_bytes)
          if ht_tile is None else int(ht_tile))
    assert Ht % tt == 0 and ((tt * Cout) % 8 == 0 or tt == Ht)
    n_htile = Ht // tt

    R, C = _selection_matrices(H, W, Ht, Wt, K)

    # Fold the conv weights into the row-selection matrices (parameter-only einsum).
    # Rows ordered (y, cout) so an Ht tile is a contiguous row block; columns ordered
    # (tap, cin, row) to match the scratch layout the kernel fills.
    acat = jnp.einsum("ocij,iyr->yojcr", weight_oikk.astype(jnp.float32),
                      jnp.asarray(R)).reshape(Ht * Cout, K * Cin * H)
    acat = acat.astype(operand_dtype)
    csel = jnp.asarray(C).astype(operand_dtype)        # 0/1 entries: exact in bf16 too
    bias_col = jnp.tile(bias.astype(jnp.float32), Ht).reshape(Ht * Cout, 1)

    # Free, layout-preserving reshape: (B, Cin, H, W) -> (B*Cin*H, W).
    x2 = x_nchw.reshape(B * Cin * H, W).astype(operand_dtype)

    out_flat = pl.pallas_call(
        _fused_upconv_kernel,
        out_shape=jax.ShapeDtypeStruct((n_bblk * Ht * Cout, tb * Wt), x_nchw.dtype),
        grid_spec=pltpu.PrefetchScalarGridSpec(
            num_scalar_prefetch=0,
            grid=(n_bblk, n_htile),                       # (batch blocks, Ht tiles)
            in_specs=[
                pl.BlockSpec((tb * Cin * H, W), lambda bb, t: (bb, 0)),
                pl.BlockSpec((K, W, Wt), lambda bb, t: (0, 0, 0)),
                pl.BlockSpec((tt * Cout, K * Cin * H), lambda bb, t: (t, 0)),
                pl.BlockSpec((tt * Cout, 1), lambda bb, t: (t, 0)),
            ],
            out_specs=pl.BlockSpec((tt * Cout, tb * Wt),
                                   lambda bb, t: (bb * n_htile + t, 0)),
            scratch_shapes=[pltpu.VMEM((K * Cin * H, tb * Wt), operand_dtype)],
        ),
        compiler_params=pltpu.CompilerParams(
            dimension_semantics=("parallel", "arbitrary")),
    )(x2, csel, acat, bias_col)

    # Layout plumbing back to NCHW (the lane-dense store above is what matters; this
    # wrapper transpose is pure data movement handled by XLA).
    out = out_flat.reshape(n_bblk, Ht, Cout, tb, Wt)
    out = out.transpose(0, 3, 2, 1, 4).reshape(B, Cout, Ht, Wt)
    return out


def init_params(key, input_channels, n_filters, filter_size=3):
    """Kaiming-uniform weight (fan_in, relu gain) and zero bias, matching the module's
    __init__.  Weight stored in PyTorch OIHW layout: (Cout, Cin, K, K)."""
    fan_in = input_channels * filter_size * filter_size
    gain = math.sqrt(2.0)                       # calculate_gain('relu', 0)
    bound = math.sqrt(3.0) * gain / math.sqrt(fan_in)
    w = jax.random.uniform(
        key, (n_filters, input_channels, filter_size, filter_size),
        minval=-bound, maxval=bound, dtype=jnp.float32)
    b = jnp.zeros((n_filters,), dtype=jnp.float32)
    return w, b


# ---------------------------------------------------------------------------
# Self-test
# ---------------------------------------------------------------------------
if __name__ == "__main__":
    key = jax.random.PRNGKey(0)
    k_x, k_w, k_x2, k_w2 = jax.random.split(key, 4)

    def reference(x, w, b, size):
        """Plain-XLA reference: repeat-upsample -> floor-div center crop -> conv + bias."""
        k = w.shape[-1]
        pad = (k - 1) // 2
        up = jnp.repeat(jnp.repeat(x, 2, axis=2), 2, axis=3)
        dh = (up.shape[2] - size[0]) // 2
        dw = (up.shape[3] - size[1]) // 2
        cropped = up[:, :, dh:dh + size[0], dw:dw + size[1]]
        out = jax.lax.conv_general_dilated(
            cropped, w, window_strides=(1, 1),
            padding=[(pad, pad), (pad, pad)],
            dimension_numbers=("NCHW", "OIHW", "NCHW"))
        return out + b.reshape(1, -1, 1, 1)

    # --- Case 1: module-scale shapes (B=2, Cin=4, 16x16 -> crop 24x24, Cout=8, K=3) ----
    B, Cin, H, W = 2, 4, 16, 16
    Cout, K = 8, 3
    size = (24, 24)
    x = jax.random.normal(k_x, (B, Cin, H, W), dtype=jnp.float32)
    weight, bias = init_params(k_w, Cin, Cout, K)

    out = jax.block_until_ready(upsample_conv_forward(x, weight, bias, size=size))
    ref = reference(x, weight, bias, size)
    assert out.shape == (B, Cout, size[0], size[1]), out.shape
    assert jnp.allclose(out, ref, atol=1e-4, rtol=1e-4), "mismatch vs reference (case 1)"

    # Non-zero bias (module zeroes bias at init; forward must still handle any bias).
    bias_nz = 0.1 * jnp.arange(Cout, dtype=jnp.float32) - 0.3
    out_nz = jax.block_until_ready(upsample_conv_forward(x, weight, bias_nz, size=size))
    assert jnp.allclose(out_nz, reference(x, weight, bias_nz, size),
                        atol=1e-4, rtol=1e-4), "mismatch with non-zero bias"

    # --- Case 2: multi-step grid (2 batch blocks x 3 Ht tiles), asymmetric crop --------
    B2, Cin2, H2, W2 = 12, 5, 16, 16
    Cout2 = 8
    size2 = (24, 22)
    x_b = jax.random.normal(k_x2, (B2, Cin2, H2, W2), dtype=jnp.float32)
    w_b, _ = init_params(k_w2, Cin2, Cout2, K)
    b_b = 0.05 * jnp.arange(Cout2, dtype=jnp.float32)
    out_b = jax.block_until_ready(
        upsample_conv_forward(x_b, w_b, b_b, size=size2, ht_tile=8))
    assert out_b.shape == (B2, Cout2, size2[0], size2[1]), out_b.shape
    assert jnp.allclose(out_b, reference(x_b, w_b, b_b, size2),
                        atol=1e-4, rtol=1e-4), "mismatch vs reference (case 2)"

    # --- Case 3: bf16 operands (v6e/v7x MXU fast path), f32 accumulation ---------------
    out_bf = jax.block_until_ready(
        upsample_conv_forward(x, weight, bias_nz, size=size,
                              operand_dtype=jnp.bfloat16))
    assert jnp.allclose(out_bf, reference(x, weight, bias_nz, size),
                        atol=1e-1, rtol=1e-1), "bf16 path mismatch"

    print("KERNEL_OK")
</pallas_src>

<mosaic_0001>
module attributes {stable_mosaic.version = 11 : i64} {
  func.func @_fused_upconv_kernel(%arg0: i32, %arg1: i32, %arg2: memref<128x16xf32, #tpu.memory_space<vmem>>, %arg3: memref<3x16x24xf32, #tpu.memory_space<vmem>>, %arg4: memref<192x192xf32, #tpu.memory_space<vmem>>, %arg5: memref<192x1xf32, #tpu.memory_space<vmem>>, %arg6: memref<192x48xf32, #tpu.memory_space<vmem>>, %arg7: memref<192x48xf32, #tpu.memory_space<vmem>>) attributes {dimension_semantics = [#tpu.dimension_semantics<parallel>, #tpu.dimension_semantics<arbitrary>], iteration_bounds = array<i64: 1, 1>, scalar_prefetch = 0 : i64, scratch_operands = 1 : i64, tpu.core_type = #tpu.core_type<tc>, window_params = [{transform_indices = @transform_0, window_bounds = array<i64: 128, 16>}, {pipeline_mode = #tpu.pipeline_mode<synchronous>, transform_indices = @transform_1, window_bounds = array<i64: 3, 16, 24>}, {transform_indices = @transform_2, window_bounds = array<i64: 192, 192>}, {transform_indices = @transform_3, window_bounds = array<i64: 192, 1>}, {transform_indices = @transform_4, window_bounds = array<i64: 192, 48>}]} {
    %c0_i32 = arith.constant 0 : i32
    %0 = arith.cmpi eq, %arg1, %c0_i32 : i32
    %1 = arith.extui %0 : i1 to i32
    %c0_i32_0 = arith.constant 0 : i32
    %2 = arith.cmpi ne, %1, %c0_i32_0 : i32
    scf.if %2 {
      %c0_8 = arith.constant 0 : index
      %c0_9 = arith.constant 0 : index
      %10 = vector.load %arg2[%c0_8, %c0_9] : memref<128x16xf32, #tpu.memory_space<vmem>>, vector<128x16xf32>
      %c0_10 = arith.constant 0 : index
      %c0_11 = arith.constant 0 : index
      %c0_12 = arith.constant 0 : index
      %11 = vector.load %arg3[%c0_10, %c0_11, %c0_12] : memref<3x16x24xf32, #tpu.memory_space<vmem>>, vector<1x16x24xf32>
      %12 = vector.shape_cast %11 : vector<1x16x24xf32> to vector<16x24xf32>
      %cst_13 = arith.constant dense<0.000000e+00> : vector<128x24xf32>
      %13 = tpu.matmul %10, %12, %cst_13 {dimension_numbers = #tpu.dot_dimension_numbers<[1], [0], [0], [1], [0, 0, 1, 1], [], []>} : vector<128x16xf32>, vector<16x24xf32>, vector<128x24xf32> -> vector<128x24xf32>
      %14 = vector.extract_strided_slice %13 {offsets = [0, 0], sizes = [64, 24], strides = [1, 1]} : vector<128x24xf32> to vector<64x24xf32>
      %c0_14 = arith.constant 0 : index
      %c0_15 = arith.constant 0 : index
      %15 = vector.load %arg7[%c0_14, %c0_15] : memref<192x48xf32, #tpu.memory_space<vmem>>, vector<64x24xf32>
      tpu.vector_store %arg7[%c0_14, %c0_15], %14 {strides = array<i32>} : memref<192x48xf32, #tpu.memory_space<vmem>>, vector<64x24xf32>,
      %16 = vector.extract_strided_slice %13 {offsets = [64, 0], sizes = [64, 24], strides = [1, 1]} : vector<128x24xf32> to vector<64x24xf32>
      %c0_16 = arith.constant 0 : index
      %c24 = arith.constant 24 : index
      %17 = vector.load %arg7[%c0_16, %c24] : memref<192x48xf32, #tpu.memory_space<vmem>>, vector<64x24xf32>
      tpu.vector_store %arg7[%c0_16, %c24], %16 {strides = array<i32>} : memref<192x48xf32, #tpu.memory_space<vmem>>, vector<64x24xf32>,
      %c1 = arith.constant 1 : index
      %c0_17 = arith.constant 0 : index
      %c0_18 = arith.constant 0 : index
      %18 = vector.load %arg3[%c1, %c0_17, %c0_18] : memref<3x16x24xf32, #tpu.memory_space<vmem>>, vector<1x16x24xf32>
      %19 = vector.shape_cast %18 : vector<1x16x24xf32> to vector<16x24xf32>
      %cst_19 = arith.constant dense<0.000000e+00> : vector<128x24xf32>
      %20 = tpu.matmul %10, %19, %cst_19 {dimension_numbers = #tpu.dot_dimension_numbers<[1], [0], [0], [1], [0, 0, 1, 1], [], []>} : vector<128x16xf32>, vector<16x24xf32>, vector<128x24xf32> -> vector<128x24xf32>
      %21 = vector.extract_strided_slice %20 {offsets = [0, 0], sizes = [64, 24], strides = [1, 1]} : vector<128x24xf32> to vector<64x24xf32>
      %c64 = arith.constant 64 : index
      %c0_20 = arith.constant 0 : index
      %22 = vector.load %arg7[%c64, %c0_20] : memref<192x48xf32, #tpu.memory_space<vmem>>, vector<64x24xf32>
      tpu.vector_store %arg7[%c64, %c0_20], %21 {strides = array<i32>} : memref<192x48xf32, #tpu.memory_space<vmem>>, vector<64x24xf32>,
      %23 = vector.extract_strided_slice %20 {offsets = [64, 0], sizes = [64, 24], strides = [1, 1]} : vector<128x24xf32> to vector<64x24xf32>
      %c64_21 = arith.constant 64 : index
      %c24_22 = arith.constant 24 : index
      %24 = vector.load %arg7[%c64_21, %c24_22] : memref<192x48xf32, #tpu.memory_space<vmem>>, vector<64x24xf32>
      tpu.vector_store %arg7[%c64_21, %c24_22], %23 {strides = array<i32>} : memref<192x48xf32, #tpu.memory_space<vmem>>, vector<64x24xf32>,
      %c2 = arith.constant 2 : index
      %c0_23 = arith.constant 0 : index
      %c0_24 = arith.constant 0 : index
      %25 = vector.load %arg3[%c2, %c0_23, %c0_24] : memref<3x16x24xf32, #tpu.memory_space<vmem>>, vector<1x16x24xf32>
      %26 = vector.shape_cast %25 : vector<1x16x24xf32> to vector<16x24xf32>
      %cst_25 = arith.constant dense<0.000000e+00> : vector<128x24xf32>
      %27 = tpu.matmul %10, %26, %cst_25 {dimension_numbers = #tpu.dot_dimension_numbers<[1], [0], [0], [1], [0, 0, 1, 1], [], []>} : vector<128x16xf32>, vector<16x24xf32>, vector<128x24xf32> -> vector<128x24xf32>
      %28 = vector.extract_strided_slice %27 {offsets = [0, 0], sizes = [64, 24], strides = [1, 1]} : vector<128x24xf32> to vector<64x24xf32>
      %c128 = arith.constant 128 : index
      %c0_26 = arith.constant 0 : index
      %29 = vector.load %arg7[%c128, %c0_26] : memref<192x48xf32, #tpu.memory_space<vmem>>, vector<64x24xf32>
      tpu.vector_store %arg7[%c128, %c0_26], %28 {strides = array<i32>} : memref<192x48xf32, #tpu.memory_space<vmem>>, vector<64x24xf32>,
      %30 = vector.extract_strided_slice %27 {offsets = [64, 0], sizes = [64, 24], strides = [1, 1]} : vector<128x24xf32> to vector<64x24xf32>
      %c128_27 = arith.constant 128 : index
      %c24_28 = arith.constant 24 : index
      %31 = vector.load %arg7[%c128_27, %c24_28] : memref<192x48xf32, #tpu.memory_space<vmem>>, vector<64x24xf32>
      tpu.vector_store %arg7[%c128_27, %c24_28], %30 {strides = array<i32>} : memref<192x48xf32, #tpu.memory_space<vmem>>, vector<64x24xf32>,
    } else {
    }
    %c0 = arith.constant 0 : index
    %c0_1 = arith.constant 0 : index
    %3 = vector.load %arg4[%c0, %c0_1] : memref<192x192xf32, #tpu.memory_space<vmem>>, vector<192x192xf32>
    %c0_2 = arith.constant 0 : index
    %c0_3 = arith.constant 0 : index
    %4 = vector.load %arg7[%c0_2, %c0_3] : memref<192x48xf32, #tpu.memory_space<vmem>>, vector<192x48xf32>
    %cst = arith.constant dense<0.000000e+00> : vector<192x48xf32>
    %5 = tpu.matmul %3, %4, %cst {dimension_numbers = #tpu.dot_dimension_numbers<[1], [0], [0], [1], [0, 0, 1, 1], [], []>} : vector<192x192xf32>, vector<192x48xf32>, vector<192x48xf32> -> vector<192x48xf32>
    %c0_4 = arith.constant 0 : index
    %c0_5 = arith.constant 0 : index
    %6 = vector.load %arg5[%c0_4, %c0_5] : memref<192x1xf32, #tpu.memory_space<vmem>>, vector<192x1xf32>
    %7 = vector.broadcast %6 : vector<192x1xf32> to vector<192x48xf32>
    %8 = arith.addf %5, %7 : vector<192x48xf32>
    %c0_6 = arith.constant 0 : index
    %c0_7 = arith.constant 0 : index
    %9 = vector.load %arg6[%c0_6, %c0_7] : memref<192x48xf32, #tpu.memory_space<vmem>>, vector<192x48xf32>
    tpu.vector_store %arg6[%c0_6, %c0_7], %8 {strides = array<i32>} : memref<192x48xf32, #tpu.memory_space<vmem>>, vector<192x48xf32>,
    return
  }
  func.func @transform_0(%arg0: i32, %arg1: i32) -> (i32, i32) {
    %c0_i32 = arith.constant 0 : i32
    %c0_i32_0 = arith.constant 0 : i32
    return %arg0, %c0_i32 : i32, i32
  }
  func.func @transform_1(%arg0: i32, %arg1: i32) -> (i32, i32, i32) {
    %c0_i32 = arith.constant 0 : i32
    %c0_i32_0 = arith.constant 0 : i32
    %c0_i32_1 = arith.constant 0 : i32
    %c0_i32_2 = arith.constant 0 : i32
    return %c0_i32, %c0_i32_0, %c0_i32_1 : i32, i32, i32
  }
  func.func @transform_2(%arg0: i32, %arg1: i32) -> (i32, i32) {
    %c0_i32 = arith.constant 0 : i32
    %c0_i32_0 = arith.constant 0 : i32
    return %arg1, %c0_i32 : i32, i32
  }
  func.func @transform_3(%arg0: i32, %arg1: i32) -> (i32, i32) {
    %c0_i32 = arith.constant 0 : i32
    %c0_i32_0 = arith.constant 0 : i32
    return %arg1, %c0_i32 : i32, i32
  }
  func.func @transform_4(%arg0: i32, %arg1: i32) -> (i32, i32) {
    %c1_i32 = arith.constant 1 : i32
    %0 = arith.muli %arg0, %c1_i32 : i32
    %1 = arith.addi %0, %arg1 : i32
    %c0_i32 = arith.constant 0 : i32
    %c0_i32_0 = arith.constant 0 : i32
    return %1, %c0_i32 : i32, i32
  }
}

</mosaic_0001>

<bundles_post_ra>
// kernel: tile.8
= control target key start
LH: loop header
LB: loop body
LE: loop exit
PB: predicated region body
PF: predicated region fallthrough
CT: control target
= control target key end

     0   :  { %s34_s0 = inlined_call_operand.vmem [shape: f32[8], index: 0, kind: input, shape index: {}]   ;;  %s35_s1 = inlined_call_operand.vmem [shape: f32[24,8], index: 1, kind: output, shape index: {}]  }
   0x1   :  { %v4_v0 = vld [vmem:[%s34_s0] ss:$0 sm:$0xff] }
   0x2   :  { %5 = vst [vmem:[%s35_s1] sm:$0xff] %v4_v0  ;;  %10 = vst [vmem:[%s35_s1 + $0x8] sm:$0xff] %v4_v0 }
   0x3   :  { %11 = vst [vmem:[%s35_s1 + $0x10] sm:$0xff] %v4_v0 }

// kernel: tile.0
= control target key start
LH: loop header
LB: loop body
LE: loop exit
PB: predicated region body
PF: predicated region fallthrough
CT: control target
= control target key end

     0   :  { %vm3_vm0 = vcmask 7168   ;;  %s272_s24 = smov 126   ;;  %s273_s25 = smov 125   ;;  %s489_s0 = inlined_call_operand.vmem [shape: f32[24,8], index: 0, kind: input, shape index: {}]   ;;  %s490_s1 = inlined_call_operand.vmem [shape: f32[192,1], index: 1, kind: output, shape index: {}]  }
   0x1   :  { %v20_v0 = vld [vmem:[%s489_s0] sm:$0xff]   ;;  %v213_v1 = vld [vmem:[%s489_s0 + $0x10] sm:$0xff]   ;;  %v210_v2 = vld [vmem:[%s489_s0 + $0x8] sm:$0xff]   ;;  %s271_s0 = smov 127   ;;  %s274_s26 = smov 124  }
   0x2   :  { %21 = vrot.lane.b32.xlu0 %v20_v0, %s271_s0  ;;  %39 = vrot.lane.b32.xlu1 %v213_v1, %s271_s0  ;;  %4 = vst.msk [vmem:[%s490_s1] ss:$8 sm:$0xf] %vm3_vm0, %v20_v0   ;;  %5 = vst.msk [vmem:[%s490_s1] ss:$8 sm:$0xf0] %vm3_vm0, %v20_v0  }
   0x3   :  { %203 = vst.msk [vmem:[%s490_s1 + $0x40] ss:$8 sm:$0xf] %vm3_vm0, %v210_v2   ;;  %204 = vst.msk [vmem:[%s490_s1 + $0x40] ss:$8 sm:$0xf0] %vm3_vm0, %v210_v2  }
   0x4   :  { %206 = vst.msk [vmem:[%s490_s1 + $0x80] ss:$8 sm:$0xf] %vm3_vm0, %v213_v1   ;;  %207 = vst.msk [vmem:[%s490_s1 + $0x80] ss:$8 sm:$0xf0] %vm3_vm0, %v213_v1  }
   0x5   :  { %s275_s27 = smov 123   ;;  %s276_s28 = smov 122  }
   0x6   :  { %30 = vrot.lane.b32.xlu0 %v210_v2, %s271_s0  ;;  %47 = vrot.lane.b32.xlu1 %v20_v0, %s272_s24  ;;  %s277_s29 = smov 121  }
   0xa   :  { %56 = vrot.lane.b32.xlu0 %v210_v2, %s272_s24  ;;  %65 = vrot.lane.b32.xlu1 %v213_v1, %s272_s24 }
   0xe   :  { %73 = vrot.lane.b32.xlu0 %v20_v0, %s273_s25  ;;  %82 = vrot.lane.b32.xlu1 %v210_v2, %s273_s25 }
  0x12   :  { %91 = vrot.lane.b32.xlu0 %v213_v1, %s273_s25  ;;  %99 = vrot.lane.b32.xlu1 %v20_v0, %s274_s26 }
  0x16   :  { %108 = vrot.lane.b32.xlu0 %v210_v2, %s274_s26  ;;  %117 = vrot.lane.b32.xlu1 %v213_v1, %s274_s26 }
  0x1a   :  { %125 = vrot.lane.b32.xlu0 %v20_v0, %s275_s27  ;;  %134 = vrot.lane.b32.xlu1 %v210_v2, %s275_s27 }
  0x1e   :  { %143 = vrot.lane.b32.xlu0 %v213_v1, %s275_s27  ;;  %151 = vrot.lane.b32.xlu1 %v20_v0, %s276_s28 }
  0x22   :  { %160 = vrot.lane.b32.xlu0 %v210_v2, %s276_s28  ;;  %169 = vrot.lane.b32.xlu1 %v213_v1, %s276_s28 }
  0x26   :  { %177 = vrot.lane.b32.xlu0 %v20_v0, %s277_s29  ;;  %186 = vrot.lane.b32.xlu1 %v210_v2, %s277_s29 }
  0x2a   :  { %195 = vrot.lane.b32.xlu0 %v213_v1, %s277_s29 }
  0x74   :  { %v22_v3 = vpop.permute.xlu0 %21   ;;  %v40_v4 = vpop.permute.xlu1 %39  }
  0x75   :  { %208 = vst.msk [vmem:[%s490_s1 + $0x1] ss:$8 sm:$0xf] %vm3_vm0, %v22_v3   ;;  %209 = vst.msk [vmem:[%s490_s1 + $0x1] ss:$8 sm:$0xf0] %vm3_vm0, %v22_v3  }
  0x76   :  { %214 = vst.msk [vmem:[%s490_s1 + $0x81] ss:$8 sm:$0xf] %vm3_vm0, %v40_v4   ;;  %215 = vst.msk [vmem:[%s490_s1 + $0x81] ss:$8 sm:$0xf0] %vm3_vm0, %v40_v4  }
  0x78   :  { %v31_v5 = vpop.permute.xlu0 %30   ;;  %v48_v6 = vpop.permute.xlu1 %47  }
  0x79   :  { %211 = vst.msk [vmem:[%s490_s1 + $0x41] ss:$8 sm:$0xf] %vm3_vm0, %v31_v5   ;;  %212 = vst.msk [vmem:[%s490_s1 + $0x41] ss:$8 sm:$0xf0] %vm3_vm0, %v31_v5  }
  0x7a   :  { %216 = vst.msk [vmem:[%s490_s1 + $0x2] ss:$8 sm:$0xf] %vm3_vm0, %v48_v6   ;;  %217 = vst.msk [vmem:[%s490_s1 + $0x2] ss:$8 sm:$0xf0] %vm3_vm0, %v48_v6  }
  0x7c   :  { %v57_v7 = vpop.permute.xlu0 %56   ;;  %v66_v8 = vpop.permute.xlu1 %65  }
  0x7d   :  { %219 = vst.msk [vmem:[%s490_s1 + $0x42] ss:$8 sm:$0xf] %vm3_vm0, %v57_v7   ;;  %220 = vst.msk [vmem:[%s490_s1 + $0x42] ss:$8 sm:$0xf0] %vm3_vm0, %v57_v7  }
  0x7e   :  { %222 = vst.msk [vmem:[%s490_s1 + $0x82] ss:$8 sm:$0xf] %vm3_vm0, %v66_v8   ;;  %223 = vst.msk [vmem:[%s490_s1 + $0x82] ss:$8 sm:$0xf0] %vm3_vm0, %v66_v8  }
  0x80   :  { %v74_v9 = vpop.permute.xlu0 %73   ;;  %v83_v10 = vpop.permute.xlu1 %82  }
  0x81   :  { %224 = vst.msk [vmem:[%s490_s1 + $0x3] ss:$8 sm:$0xf] %vm3_vm0, %v74_v9   ;;  %225 = vst.msk [vmem:[%s490_s1 + $0x3] ss:$8 sm:$0xf0] %vm3_vm0, %v74_v9  }
  0x82   :  { %227 = vst.msk [vmem:[%s490_s1 + $0x43] ss:$8 sm:$0xf] %vm3_vm0, %v83_v10   ;;  %228 = vst.msk [vmem:[%s490_s1 + $0x43] ss:$8 sm:$0xf0] %vm3_vm0, %v83_v10  }
  0x84   :  { %v92_v11 = vpop.permute.xlu0 %91   ;;  %v100_v12 = vpop.permute.xlu1 %99  }
  0x85   :  { %230 = vst.msk [vmem:[%s490_s1 + $0x83] ss:$8 sm:$0xf] %vm3_vm0, %v92_v11   ;;  %231 = vst.msk [vmem:[%s490_s1 + $0x83] ss:$8 sm:$0xf0] %vm3_vm0, %v92_v11  }
  0x86   :  { %232 = vst.msk [vmem:[%s490_s1 + $0x4] ss:$8 sm:$0xf] %vm3_vm0, %v100_v12   ;;  %233 = vst.msk [vmem:[%s490_s1 + $0x4] ss:$8 sm:$0xf0] %vm3_vm0, %v100_v12  }
  0x88   :  { %v109_v13 = vpop.permute.xlu0 %108   ;;  %v118_v14 = vpop.permute.xlu1 %117  }
  0x89   :  { %235 = vst.msk [vmem:[%s490_s1 + $0x44] ss:$8 sm:$0xf] %vm3_vm0, %v109_v13   ;;  %236 = vst.msk [vmem:[%s490_s1 + $0x44] ss:$8 sm:$0xf0] %vm3_vm0, %v109_v13  }
  0x8a   :  { %238 = vst.msk [vmem:[%s490_s1 + $0x84] ss:$8 sm:$0xf] %vm3_vm0, %v118_v14   ;;  %239 = vst.msk [vmem:[%s490_s1 + $0x84] ss:$8 sm:$0xf0] %vm3_vm0, %v118_v14  }
  0x8c   :  { %v126_v15 = vpop.permute.xlu0 %125   ;;  %v135_v16 = vpop.permute.xlu1 %134  }
  0x8d   :  { %240 = vst.msk [vmem:[%s490_s1 + $0x5] ss:$8 sm:$0xf] %vm3_vm0, %v126_v15   ;;  %241 = vst.msk [vmem:[%s490_s1 + $0x5] ss:$8 sm:$0xf0] %vm3_vm0, %v126_v15  }
  0x8e   :  { %243 = vst.msk [vmem:[%s490_s1 + $0x45] ss:$8 sm:$0xf] %vm3_vm0, %v135_v16   ;;  %244 = vst.msk [vmem:[%s490_s1 + $0x45] ss:$8 sm:$0xf0] %vm3_vm0, %v135_v16  }
  0x90   :  { %v144_v17 = vpop.permute.xlu0 %143   ;;  %v152_v18 = vpop.permute.xlu1 %151  }
  0x91   :  { %246 = vst.msk [vmem:[%s490_s1 + $0x85] ss:$8 sm:$0xf] %vm3_vm0, %v144_v17   ;;  %247 = vst.msk [vmem:[%s490_s1 + $0x85] ss:$8 sm:$0xf0] %vm3_vm0, %v144_v17  }
  0x92   :  { %248 = vst.msk [vmem:[%s490_s1 + $0x6] ss:$8 sm:$0xf] %vm3_vm0, %v152_v18   ;;  %249 = vst.msk [vmem:[%s490_s1 + $0x6] ss:$8 sm:$0xf0] %vm3_vm0, %v152_v18  }
  0x94   :  { %v161_v19 = vpop.permute.xlu0 %160   ;;  %v170_v20 = vpop.permute.xlu1 %169  }
  0x95   :  { %251 = vst.msk [vmem:[%s490_s1 + $0x46] ss:$8 sm:$0xf] %vm3_vm0, %v161_v19   ;;  %252 = vst.msk [vmem:[%s490_s1 + $0x46] ss:$8 sm:$0xf0] %vm3_vm0, %v161_v19  }
  0x96   :  { %254 = vst.msk [vmem:[%s490_s1 + $0x86] ss:$8 sm:$0xf] %vm3_vm0, %v170_v20   ;;  %255 = vst.msk [vmem:[%s490_s1 + $0x86] ss:$8 sm:$0xf0] %vm3_vm0, %v170_v20  }
  0x98   :  { %v178_v21 = vpop.permute.xlu0 %177   ;;  %v187_v22 = vpop.permute.xlu1 %186  }
  0x99   :  { %256 = vst.msk [vmem:[%s490_s1 + $0x7] ss:$8 sm:$0xf] %vm3_vm0, %v178_v21   ;;  %257 = vst.msk [vmem:[%s490_s1 + $0x7] ss:$8 sm:$0xf0] %vm3_vm0, %v178_v21  }
  0x9a   :  { %259 = vst.msk [vmem:[%s490_s1 + $0x47] ss:$8 sm:$0xf] %vm3_vm0, %v187_v22   ;;  %260 = vst.msk [vmem:[%s490_s1 + $0x47] ss:$8 sm:$0xf0] %vm3_vm0, %v187_v22  }
  0x9c   :  { %v196_v23 = vpop.permute.xlu0 %195  }
  0x9d   :  { %262 = vst.msk [vmem:[%s490_s1 + $0x87] ss:$8 sm:$0xf] %vm3_vm0, %v196_v23   ;;  %263 = vst.msk [vmem:[%s490_s1 + $0x87] ss:$8 sm:$0xf0] %vm3_vm0, %v196_v23  }

// kernel: upsample_conv_forward.1
= control target key start
LH: loop header
LB: loop body
LE: loop exit
PB: predicated region body
PF: predicated region fallthrough
CT: control target
= control target key end

     0   :  { %vm53_vm0 = vcmask 130048   ;;  %vm247_vm1 = vcmask 195584   ;;  %v1505_v42 = vmov 0.0|0.0   ;;  %vm905_vm2 = vcmask 523264   ;;  %s2082_s1 = inlined_call_operand.vmem [shape: f32[3,16,24], index: 1, kind: input, shape index: {}]   ;;  %s2083_s0 = inlined_call_operand.vmem [shape: f32[128,16], index: 0, kind: input, shape index: {}]   ;;  %s2084_s2 = inlined_call_operand.vmem [shape: f32[192,192], index: 2, kind: input, shape index: {}]   ;;  %s2085_s3 = inlined_call_operand.vmem [shape: f32[192,1], index: 3, kind: input, shape index: {}]   ;;  %s2086_s4 = inlined_call_operand.vmem [shape: f32[192,48], index: 4, kind: output, shape index: {}]  }
   0x1   :  { %v51_v0 = vld [vmem:[%s2082_s1] sm:$0xff]  ;;  %v52_v1 = vld [vmem:[%s2082_s1 + $0x8] sm:$0xff]  ;;  %v1230_v8 = vld [vmem:[%s2082_s1 + $0x10] sm:$0xff]  ;;  %vm288_vm3 = vcmask 392384   ;;  %vm1163_vm4 = vcmask 392192  }
   0x2   :  { %v35_v2 = vld [vmem:[%s2083_s0] sm:$0xff]  ;;  %v1428_v3 = vpack.c.bf16 %v52_v1, %v51_v0  ;;  %v1249_v5 = vld [vmem:[%s2082_s1 + $0x28] sm:$0xff]  ;;  %v1231_v9 = vld [vmem:[%s2082_s1 + $0x18] sm:$0xff] }
   0x3   :  { %1348 = vmatprep.mubr.msk.f32.mxu0 %vm53_vm0, %v35_v2  ;;  %v1248_v4 = vld [vmem:[%s2082_s1 + $0x20] sm:$0xff]  ;;  %1376 = vmatprep.mubr.msk.f32.mxu1 %vm53_vm0, %v35_v2  ;;  %v36_v7 = vld [vmem:[%s2083_s0 + $0x8] sm:$0xff]  ;;  %v37_v10 = vld [vmem:[%s2083_s0 + $0x10] sm:$0xff]  ;;  %v1432_v11 = vpack.c.bf16 %v1231_v9, %v1230_v8 }
   0x4   :  { %1429 = vmatprep.subr.bf16.mxu0 %v1428_v3  ;;  %v1436_v6 = vpack.c.bf16 %v1249_v5, %v1248_v4  ;;  %v38_v12 = vld [vmem:[%s2083_s0 + $0x18] sm:$0xff]  ;;  %v39_v13 = vld [vmem:[%s2083_s0 + $0x20] sm:$0xff]  ;;  %v40_v14 = vld [vmem:[%s2083_s0 + $0x28] sm:$0xff] }
   0x5   :  { %1431 = vmatpush3.bf16.msra.mxu0 %v1428_v3  ;;  %1433 = vmatprep.subr.bf16.mxu1 %v1432_v11  ;;  %v41_v15 = vld [vmem:[%s2083_s0 + $0x30] sm:$0xff]  ;;  %v42_v16 = vld [vmem:[%s2083_s0 + $0x38] sm:$0xff]  ;;  %v43_v17 = vld [vmem:[%s2083_s0 + $0x40] sm:$0xff] }
   0x6   :  { %1437 = vmatprep.subr.bf16.mxu0 %v1436_v6  ;;  %1435 = vmatpush3.bf16.msra.mxu1 %v1432_v11  ;;  %v44_v18 = vld [vmem:[%s2083_s0 + $0x48] sm:$0xff]  ;;  %v45_v19 = vld [vmem:[%s2083_s0 + $0x50] sm:$0xff]  ;;  %v46_v20 = vld [vmem:[%s2083_s0 + $0x58] sm:$0xff] }
   0x7   :  { %v47_v21 = vld [vmem:[%s2083_s0 + $0x60] sm:$0xff]  ;;  %v48_v22 = vld [vmem:[%s2083_s0 + $0x68] sm:$0xff]  ;;  %v49_v23 = vld [vmem:[%s2083_s0 + $0x70] sm:$0xff]  ;;  %1476 = vmatprep.subr.bf16.mxu1 %v1505_v42 }
   0x8   :  { %1349 = vmatmul.mubr.msk.f32.vlgmr.msra.gmra.mrb[0].mxu0 %vm53_vm0, %v36_v7  ;;  %v50_v24 = vld [vmem:[%s2083_s0 + $0x78] sm:$0xff]  ;;  %s1506_s0 = smov 24   ;;  %v706_v11 = vld [vmem:[%s2084_s2 + $0x88] sm:$0xff] }
   0x9   :  { %1351 = vmatprep.mubr.msk.f32.mxu0 %vm53_vm0, %v37_v10  ;;  %1439 = vmatpush3.bf16.msra.mxu0 %v1436_v6 }
   0xa   :  { %1377 = vmatmul.mubr.msk.f32.vlgmr.msra.gmra.mrb[0].mxu1 %vm53_vm0, %v36_v7  ;;  %1440 = vmatprep.subr.bf16.mxu0 %v1505_v42 }
   0xb   :  { %1379 = vmatprep.mubr.msk.f32.mxu1 %vm53_vm0, %v37_v10 }
   0xc   :  { %1352 = vmatmul.mubr.msk.f32.gmra.mrb[2].mxu0 %vm53_vm0, %v38_v12 }
   0xd   :  { %1354 = vmatprep.mubr.msk.f32.mxu0 %vm53_vm0, %v39_v13 }
   0xe   :  { %1380 = vmatmul.mubr.msk.f32.gmra.mrb[2].mxu1 %vm53_vm0, %v38_v12 }
   0xf   :  { %1382 = vmatprep.mubr.msk.f32.mxu1 %vm53_vm0, %v39_v13 }
  0x10   :  { %1355 = vmatmul.mubr.msk.f32.gmra.mrb[4].mxu0 %vm53_vm0, %v40_v14 }
  0x11   :  { %1357 = vmatprep.mubr.msk.f32.mxu0 %vm53_vm0, %v41_v15 }
  0x12   :  { %1383 = vmatmul.mubr.msk.f32.gmra.mrb[4].mxu1 %vm53_vm0, %v40_v14 }
  0x13   :  { %1385 = vmatprep.mubr.msk.f32.mxu1 %vm53_vm0, %v41_v15 }
  0x14   :  { %1358 = vmatmul.mubr.msk.f32.gmra.mrb[6].mxu0 %vm53_vm0, %v42_v16 }
  0x15   :  { %1360 = vmatprep.mubr.msk.f32.mxu0 %vm53_vm0, %v43_v17 }
  0x16   :  { %1386 = vmatmul.mubr.msk.f32.gmra.mrb[6].mxu1 %vm53_vm0, %v42_v16 }
  0x17   :  { %1388 = vmatprep.mubr.msk.f32.mxu1 %vm53_vm0, %v43_v17 }
  0x18   :  { %1361 = vmatmul.mubr.msk.f32.gmra.mrb[8].mxu0 %vm53_vm0, %v44_v18 }
  0x19   :  { %1363 = vmatprep.mubr.msk.f32.mxu0 %vm53_vm0, %v45_v19 }
  0x1a   :  { %1389 = vmatmul.mubr.msk.f32.gmra.mrb[8].mxu1 %vm53_vm0, %v44_v18 }
  0x1b   :  { %1391 = vmatprep.mubr.msk.f32.mxu1 %vm53_vm0, %v45_v19 }
  0x1c   :  { %1364 = vmatmul.mubr.msk.f32.gmra.mrb[10].mxu0 %vm53_vm0, %v46_v20 }
  0x1d   :  { %1366 = vmatprep.mubr.msk.f32.mxu0 %vm53_vm0, %v47_v21 }
  0x1e   :  { %1392 = vmatmul.mubr.msk.f32.gmra.mrb[10].mxu1 %vm53_vm0, %v46_v20 }
  0x1f   :  { %1394 = vmatprep.mubr.msk.f32.mxu1 %vm53_vm0, %v47_v21 }
  0x20   :  { %1367 = vmatmul.mubr.msk.f32.gmra.mrb[12].mxu0 %vm53_vm0, %v48_v22 }
  0x21   :  { %1369 = vmatprep.mubr.msk.f32.mxu0 %vm53_vm0, %v49_v23 }
  0x22   :  { %1395 = vmatmul.mubr.msk.f32.gmra.mrb[12].mxu1 %vm53_vm0, %v48_v22 }
  0x23   :  { %1397 = vmatprep.mubr.msk.f32.mxu1 %vm53_vm0, %v49_v23 }
  0x24   :  { %1370 = vmatmul.mubr.msk.f32.gmra.mrb[14].mxu0 %vm53_vm0, %v50_v24 }
  0x25   :  { %1404 = vmatprep.mubr.msk.f32.mxu0 %vm53_vm0, %v35_v2 }
  0x26   :  { %1398 = vmatmul.mubr.msk.f32.gmra.mrb[14].mxu1 %vm53_vm0, %v50_v24 }
  0x27   :  { %1274 = vmatprep.mubr.msk.f32.mxu1 %vm905_vm2, %v706_v11 }
  0x28   :  { %1405 = vmatmul.mubr.msk.f32.vlgmr.msra.gmra.mrb[16].mxu0 %vm53_vm0, %v36_v7 }
  0x29   :  { %1407 = vmatprep.mubr.msk.f32.mxu0 %vm53_vm0, %v37_v10  ;;  %v690_v10 = vld [vmem:[%s2084_s2 + $0x8] sm:$0xff] }
  0x2c   :  { %1408 = vmatmul.mubr.msk.f32.gmra.mrb[18].mxu0 %vm53_vm0, %v38_v12  ;;  %v1507_v12 = vmov 0  }
  0x2d   :  { %1410 = vmatprep.mubr.msk.f32.mxu0 %vm53_vm0, %v39_v13  ;;  %1504 = vset.pattern.permute.xlu1 %v1507_v12  ;;  %v762_v13 = vld [vmem:[%s2085_s3 + $0x8] sm:$0xff] }
  0x2e   :  { %1503 = vset.pattern.permute.xlu0 %v1507_v12 }
  0x30   :  { %1411 = vmatmul.mubr.msk.f32.gmra.mrb[20].mxu0 %vm53_vm0, %v40_v14  ;;  %v761_v14 = vld [vmem:[%s2085_s3] sm:$0xff] }
  0x31   :  { %1413 = vmatprep.mubr.msk.f32.mxu0 %vm53_vm0, %v41_v15  ;;  %v763_v15 = vld [vmem:[%s2085_s3 + $0x10] sm:$0xff] }
  0x34   :  { %1414 = vmatmul.mubr.msk.f32.gmra.mrb[22].mxu0 %vm53_vm0, %v42_v16  ;;  %v764_v16 = vld [vmem:[%s2085_s3 + $0x18] sm:$0xff] }
  0x35   :  { %1416 = vmatprep.mubr.msk.f32.mxu0 %vm53_vm0, %v43_v17  ;;  %v765_v17 = vld [vmem:[%s2085_s3 + $0x20] sm:$0xff] }
  0x38   :  { %1417 = vmatmul.mubr.msk.f32.gmra.mrb[24].mxu0 %vm53_vm0, %v44_v18  ;;  %v766_v18 = vld [vmem:[%s2085_s3 + $0x28] sm:$0xff] }
  0x39   :  { %1419 = vmatprep.mubr.msk.f32.mxu0 %vm53_vm0, %v45_v19  ;;  %v767_v19 = vld [vmem:[%s2085_s3 + $0x30] sm:$0xff] }
  0x3c   :  { %1420 = vmatmul.mubr.msk.f32.gmra.mrb[26].mxu0 %vm53_vm0, %v46_v20  ;;  %v768_v20 = vld [vmem:[%s2085_s3 + $0x38] sm:$0xff] }
  0x3d   :  { %1422 = vmatprep.mubr.msk.f32.mxu0 %vm53_vm0, %v47_v21 }
  0x40   :  { %1423 = vmatmul.mubr.msk.f32.gmra.mrb[28].mxu0 %vm53_vm0, %v48_v22  ;;  %v769_v22 = vld [vmem:[%s2085_s3 + $0x40] sm:$0xff] }
  0x41   :  { %1425 = vmatprep.mubr.msk.f32.mxu0 %vm53_vm0, %v49_v23  ;;  %v770_v23 = vld [vmem:[%s2085_s3 + $0x48] sm:$0xff] }
  0x44   :  { %1426 = vmatmul.mubr.msk.f32.gmra.mrb[30].mxu0 %vm53_vm0, %v50_v24 }
  0x45   :  { %1266 = vmatprep.mubr.msk.f32.mxu0 %vm905_vm2, %v690_v10 }
  0xdb   :  { %v1350_v25 = vpop.f32.mrb[0].mxu0 }
  0xdc   :  { %249 = vst.msk [vmem:[#allocation2 + $0x8] sm:$0xff] %vm247_vm1, %v1350_v25  ;;  %v168_v26 = vpop.f32.mrb[1].mxu0 }
  0xdd   :  { %248 = vst.msk [vmem:[#allocation2] sm:$0xff] %vm247_vm1, %v168_v26  ;;  %v1378_v29 = vpop.f32.mrb[0].mxu1  ;;  %v771_v26 = vld [vmem:[%s2085_s3 + $0x50] sm:$0xff] }
  0xde   :  { %446 = vst.msk [vmem:[#allocation2 + $0x48] sm:$0xff] %vm247_vm1, %v1378_v29  ;;  %v366_v30 = vpop.f32.mrb[1].mxu1 }
  0xdf   :  { %v1353_v27 = vpop.f32.mrb[2].mxu0  ;;  %445 = vst.msk [vmem:[#allocation2 + $0x40] sm:$0xff] %vm247_vm1, %v366_v30  ;;  %v773_v30 = vld [vmem:[%s2085_s3 + $0x60] sm:$0xff] }
  0xe0   :  { %251 = vst.msk [vmem:[#allocation2 + $0x18] sm:$0xff] %vm247_vm1, %v1353_v27  ;;  %v178_v28 = vpop.f32.mrb[3].mxu0  ;;  %v772_v27 = vld [vmem:[%s2085_s3 + $0x58] sm:$0xff] }
  0xe1   :  { %250 = vst.msk [vmem:[#allocation2 + $0x10] sm:$0xff] %vm247_vm1, %v178_v28  ;;  %v1381_v33 = vpop.f32.mrb[2].mxu1 }
  0xe2   :  { %448 = vst.msk [vmem:[#allocation2 + $0x58] sm:$0xff] %vm247_vm1, %v1381_v33  ;;  %v376_v34 = vpop.f32.mrb[3].mxu1 }
  0xe3   :  { %v1356_v31 = vpop.f32.mrb[4].mxu0  ;;  %447 = vst.msk [vmem:[#allocation2 + $0x50] sm:$0xff] %vm247_vm1, %v376_v34 }
  0xe4   :  { %253 = vst.msk [vmem:[#allocation2 + $0x28] sm:$0xff] %vm247_vm1, %v1356_v31  ;;  %v188_v32 = vpop.f32.mrb[5].mxu0  ;;  %v774_v31 = vld [vmem:[%s2085_s3 + $0x68] sm:$0xff] }
  0xe5   :  { %252 = vst.msk [vmem:[#allocation2 + $0x20] sm:$0xff] %vm247_vm1, %v188_v32  ;;  %v1384_v37 = vpop.f32.mrb[4].mxu1 }
  0xe6   :  { %450 = vst.msk [vmem:[#allocation2 + $0x68] sm:$0xff] %vm247_vm1, %v1384_v37  ;;  %v386_v38 = vpop.f32.mrb[5].mxu1  ;;  %v775_v37 = vld [vmem:[%s2085_s3 + $0x70] sm:$0xff] }
  0xe7   :  { %v1359_v35 = vpop.f32.mrb[6].mxu0  ;;  %449 = vst.msk [vmem:[#allocation2 + $0x60] sm:$0xff] %vm247_vm1, %v386_v38  ;;  %v776_v38 = vld [vmem:[%s2085_s3 + $0x78] sm:$0xff] }
  0xe8   :  { %255 = vst.msk [vmem:[#allocation2 + $0x38] sm:$0xff] %vm247_vm1, %v1359_v35  ;;  %v198_v36 = vpop.f32.mrb[7].mxu0 }
  0xe9   :  { %254 = vst.msk [vmem:[#allocation2 + $0x30] sm:$0xff] %vm247_vm1, %v198_v36  ;;  %v1387_v41 = vpop.f32.mrb[6].mxu1 }
  0xea   :  { %452 = vst.msk [vmem:[#allocation2 + $0x78] sm:$0xff] %vm247_vm1, %v1387_v41  ;;  %v396_v43 = vpop.f32.mrb[7].mxu1 }
  0xeb   :  { %v1362_v39 = vpop.f32.mrb[8].mxu0  ;;  %451 = vst.msk [vmem:[#allocation2 + $0x70] sm:$0xff] %vm247_vm1, %v396_v43 }
  0xec   :  { %v208_v40 = vpop.f32.mrb[9].mxu0 }
  0xed   :  { %264 = vrot.lane.b32.xlu0 %v208_v40, %s1506_s0  ;;  %v1390_v46 = vpop.f32.mrb[8].mxu1 }
  0xee   :  { %v406_v47 = vpop.f32.mrb[9].mxu1 }
  0xef   :  { %v1365_v44 = vpop.f32.mrb[10].mxu0 }
  0xf0   :  { %270 = vrot.lane.b32.xlu1 %v1365_v44, %s1506_s0  ;;  %v218_v45 = vpop.f32.mrb[11].mxu0 }
  0xf1   :  { %266 = vrot.lane.b32.xlu0 %v1362_v39, %s1506_s0  ;;  %v1393_v50 = vpop.f32.mrb[10].mxu1 }
  0xf2   :  { %v416_v51 = vpop.f32.mrb[11].mxu1 }
  0xf3   :  { %v1368_v48 = vpop.f32.mrb[12].mxu0 }
  0xf4   :  { %268 = vrot.lane.b32.xlu1 %v218_v45, %s1506_s0  ;;  %v228_v49 = vpop.f32.mrb[13].mxu0 }
  0xf5   :  { %272 = vrot.lane.b32.xlu0 %v228_v49, %s1506_s0  ;;  %v1396_v54 = vpop.f32.mrb[12].mxu1 }
  0xf6   :  { %v426_v55 = vpop.f32.mrb[13].mxu1 }
  0xf7   :  { %v1371_v52 = vpop.f32.mrb[14].mxu0 }
  0xf8   :  { %274 = vrot.lane.b32.xlu1 %v1368_v48, %s1506_s0  ;;  %v238_v53 = vpop.f32.mrb[15].mxu0 }
  0xf9   :  { %276 = vrot.lane.b32.xlu0 %v238_v53, %s1506_s0  ;;  %v1399_v58 = vpop.f32.mrb[14].mxu1  ;;  %v779_v53 = vld [vmem:[%s2085_s3 + $0x90] sm:$0xff] }
  0xfa   :  { %v436_v59 = vpop.f32.mrb[15].mxu1 }
  0xfb   :  { %v1406_v56 = vpop.f32.mrb[16].mxu0 }
  0xfc   :  { %278 = vrot.lane.b32.xlu1 %v1371_v52, %s1506_s0  ;;  %642 = vst.msk [vmem:[#allocation2 + $0x88] sm:$0xff] %vm247_vm1, %v1406_v56  ;;  %v562_v57 = vpop.f32.mrb[17].mxu0 }
  0xfd   :  { %641 = vst.msk [vmem:[#allocation2 + $0x80] sm:$0xff] %vm247_vm1, %v562_v57  ;;  %461 = vrot.lane.b32.xlu0 %v406_v47, %s1506_s0  ;;  %v778_v47 = vld [vmem:[%s2085_s3 + $0x88] sm:$0xff] }
  0xff   :  { %v1409_v60 = vpop.f32.mrb[18].mxu0 }
 0x100   :  { %463 = vrot.lane.b32.xlu1 %v1390_v46, %s1506_s0  ;;  %644 = vst.msk [vmem:[#allocation2 + $0x98] sm:$0xff] %vm247_vm1, %v1409_v60  ;;  %v572_v61 = vpop.f32.mrb[19].mxu0  ;;  %v777_v46 = vld [vmem:[%s2085_s3 + $0x80] sm:$0xff] }
 0x101   :  { %643 = vst.msk [vmem:[#allocation2 + $0x90] sm:$0xff] %vm247_vm1, %v572_v61  ;;  %465 = vrot.lane.b32.xlu0 %v416_v51, %s1506_s0  ;;  %v781_v60 = vld [vmem:[%s2085_s3 + $0xa0] sm:$0xff]  ;;  %v782_v61 = vld [vmem:[%s2085_s3 + $0xa8] sm:$0xff] }
 0x103   :  { %v1412_v62 = vpop.f32.mrb[20].mxu0 }
 0x104   :  { %467 = vrot.lane.b32.xlu1 %v1393_v50, %s1506_s0  ;;  %646 = vst.msk [vmem:[#allocation2 + $0xa8] sm:$0xff] %vm247_vm1, %v1412_v62  ;;  %v582_v63 = vpop.f32.mrb[21].mxu0 }
 0x105   :  { %645 = vst.msk [vmem:[#allocation2 + $0xa0] sm:$0xff] %vm247_vm1, %v582_v63  ;;  %469 = vrot.lane.b32.xlu0 %v426_v55, %s1506_s0 }
 0x107   :  { %v1415_v0 = vpop.f32.mrb[22].mxu0 }
 0x108   :  { %471 = vrot.lane.b32.xlu1 %v1396_v54, %s1506_s0  ;;  %648 = vst.msk [vmem:[#allocation2 + $0xb8] sm:$0xff] %vm247_vm1, %v1415_v0  ;;  %v592_v1 = vpop.f32.mrb[23].mxu0  ;;  %v780_v54 = vld [vmem:[%s2085_s3 + $0x98] sm:$0xff] }
 0x109   :  { %647 = vst.msk [vmem:[#allocation2 + $0xb0] sm:$0xff] %vm247_vm1, %v592_v1  ;;  %473 = vrot.lane.b32.xlu0 %v436_v59, %s1506_s0 }
 0x10b   :  { %v1418_v2 = vpop.f32.mrb[24].mxu0 }
 0x10c   :  { %475 = vrot.lane.b32.xlu1 %v1399_v58, %s1506_s0  ;;  %v602_v3 = vpop.f32.mrb[25].mxu0 }
 0x10d   :  { %657 = vrot.lane.b32.xlu0 %v602_v3, %s1506_s0  ;;  %v783_v3 = vld [vmem:[%s2085_s3 + $0xb0] sm:$0xff] }
 0x10f   :  { %v1421_v4 = vpop.f32.mrb[26].mxu0 }
 0x110   :  { %659 = vrot.lane.b32.xlu1 %v1418_v2, %s1506_s0  ;;  %v612_v5 = vpop.f32.mrb[27].mxu0 }
 0x111   :  { %661 = vrot.lane.b32.xlu0 %v612_v5, %s1506_s0 }
 0x113   :  { %v1424_v6 = vpop.f32.mrb[28].mxu0 }
 0x114   :  { %663 = vrot.lane.b32.xlu1 %v1421_v4, %s1506_s0  ;;  %v622_v7 = vpop.f32.mrb[29].mxu0  ;;  %v784_v4 = vld [vmem:[%s2085_s3 + $0xb8] sm:$0xff] }
 0x115   :  { %665 = vrot.lane.b32.xlu0 %v622_v7, %s1506_s0 }
 0x117   :  { %v1427_v8 = vpop.f32.mrb[30].mxu0 }
 0x118   :  { %667 = vrot.lane.b32.xlu1 %v1424_v6, %s1506_s0  ;;  %v632_v9 = vpop.f32.mrb[31].mxu0 }
 0x119   :  { %669 = vrot.lane.b32.xlu0 %v632_v9, %s1506_s0 }
 0x11c   :  { %671 = vrot.lane.b32.xlu1 %v1427_v8, %s1506_s0 }
 0x11d   :  { %787 = vperm.xlu0 %1503, %v761_v14  }
 0x120   :  { %792 = vperm.xlu1 %1504, %v762_v13  }
 0x121   :  { %802 = vperm.xlu0 %1503, %v764_v16  }
 0x124   :  { %797 = vperm.xlu1 %1504, %v763_v15  }
 0x125   :  { %812 = vperm.xlu0 %1503, %v766_v18  }
 0x128   :  { %807 = vperm.xlu1 %1504, %v765_v17  }
 0x129   :  { %822 = vperm.xlu0 %1503, %v768_v20  }
 0x12c   :  { %817 = vperm.xlu1 %1504, %v767_v19  }
 0x12d   :  { %832 = vperm.xlu0 %1503, %v770_v23  }
 0x130   :  { %827 = vperm.xlu1 %1504, %v769_v22  }
 0x131   :  { %842 = vperm.xlu0 %1503, %v772_v27  }
 0x134   :  { %837 = vperm.xlu1 %1504, %v771_v26  }
 0x135   :  { %852 = vperm.xlu0 %1503, %v774_v31  }
 0x138   :  { %847 = vperm.xlu1 %1504, %v773_v30  }
 0x139   :  { %862 = vperm.xlu0 %1503, %v776_v38   ;;  %v707_v38 = vld [vmem:[%s2084_s2 + $0x90] sm:$0xff] }
 0x13c   :  { %857 = vperm.xlu1 %1504, %v775_v37   ;;  %v708_v37 = vld [vmem:[%s2084_s2 + $0x98] sm:$0xff] }
 0x13d   :  { %872 = vperm.xlu0 %1503, %v778_v47   ;;  %v711_v47 = vld [vmem:[%s2084_s2 + $0xb0] sm:$0xff] }
 0x140   :  { %867 = vperm.xlu1 %1504, %v777_v46   ;;  %v695_v46 = vld [vmem:[%s2084_s2 + $0x30] sm:$0xff] }
 0x141   :  { %882 = vperm.xlu0 %1503, %v780_v54   ;;  %v699_v54 = vld [vmem:[%s2084_s2 + $0x50] sm:$0xff] }
 0x144   :  { %877 = vperm.xlu1 %1504, %v779_v53   ;;  %v716_v53 = vld [vmem:[%s2084_s2 + $0xd8] sm:$0xff] }
 0x145   :  { %892 = vperm.xlu0 %1503, %v782_v61   ;;  %v720_v61 = vld [vmem:[%s2084_s2 + $0xf8] sm:$0xff] }
 0x148   :  { %887 = vperm.xlu1 %1504, %v781_v60   ;;  %v704_v60 = vld [vmem:[%s2084_s2 + $0x78] sm:$0xff] }
 0x149   :  { %902 = vperm.xlu0 %1503, %v784_v4   ;;  %v726_v4 = vld [vmem:[%s2084_s2 + $0x128] sm:$0xff] }
 0x14c   :  { %897 = vperm.xlu1 %1504, %v783_v3   ;;  %v723_v3 = vld [vmem:[%s2084_s2 + $0x110] sm:$0xff] }
 0x15f   :  { %v265_v21 = vpop.permute.xlu0 %264 }
 0x160   :  { %289 = vst.msk [vmem:[#allocation2] sm:$0xff] %vm288_vm3, %v265_v21 }
 0x162   :  { %v271_v24 = vpop.permute.xlu1 %270 }
 0x163   :  { %292 = vst.msk [vmem:[#allocation2 + $0x18] sm:$0xff] %vm288_vm3, %v271_v24  ;;  %v267_v25 = vpop.permute.xlu0 %266 }
 0x164   :  { %290 = vst.msk [vmem:[#allocation2 + $0x8] sm:$0xff] %vm288_vm3, %v267_v25 }
 0x166   :  { %v269_v28 = vpop.permute.xlu1 %268 }
 0x167   :  { %291 = vst.msk [vmem:[#allocation2 + $0x10] sm:$0xff] %vm288_vm3, %v269_v28  ;;  %v273_v29 = vpop.permute.xlu0 %272  ;;  %v737_v33 = vld [vmem:[#allocation2] sm:$0xff] }
 0x168   :  { %293 = vst.msk [vmem:[#allocation2 + $0x20] sm:$0xff] %vm288_vm3, %v273_v29 }
 0x16a   :  { %v275_v32 = vpop.permute.xlu1 %274  ;;  %v740_v41 = vld [vmem:[#allocation2 + $0x18] sm:$0xff] }
 0x16b   :  { %294 = vst.msk [vmem:[#allocation2 + $0x28] sm:$0xff] %vm288_vm3, %v275_v32  ;;  %v738_v34 = vld [vmem:[#allocation2 + $0x8] sm:$0xff]  ;;  %v277_v35 = vpop.permute.xlu0 %276 }
 0x16c   :  { %v1441_v36 = vpack.c.bf16 %v738_v34, %v737_v33  ;;  %295 = vst.msk [vmem:[#allocation2 + $0x30] sm:$0xff] %vm288_vm3, %v277_v35  ;;  %v689_v34 = vld [vmem:[%s2084_s2] sm:$0xff] }
 0x16d   :  { %v705_v35 = vld [vmem:[%s2084_s2 + $0x80] sm:$0xff] }
 0x16e   :  { %1442 = vmatpush1.bf16.msra.mxu0 %v1441_v36  ;;  %1488 = vmatpush1.bf16.msra.mxu1 %v1441_v36  ;;  %v279_v39 = vpop.permute.xlu1 %278  ;;  %v739_v40 = vld [vmem:[#allocation2 + $0x10] sm:$0xff]  ;;  %v692_v36 = vld [vmem:[%s2084_s2 + $0x18] sm:$0xff] }
 0x16f   :  { %296 = vst.msk [vmem:[#allocation2 + $0x38] sm:$0xff] %vm288_vm3, %v279_v39  ;;  %1443 = vmatprep.subr.bf16.mxu0 %v1505_v42  ;;  %1477 = vmatprep.subr.bf16.mxu1 %v1505_v42  ;;  %v1444_v43 = vpack.c.bf16 %v740_v41, %v739_v40  ;;  %v462_v44 = vpop.permute.xlu0 %461  ;;  %v741_v45 = vld [vmem:[#allocation2 + $0x20] sm:$0xff]  ;;  %v694_v39 = vld [vmem:[%s2084_s2 + $0x28] sm:$0xff] }
 0x170   :  { %485 = vst.msk [vmem:[#allocation2 + $0x40] sm:$0xff] %vm288_vm3, %v462_v44  ;;  %v710_v40 = vld [vmem:[%s2084_s2 + $0xa8] sm:$0xff]  ;;  %v693_v41 = vld [vmem:[%s2084_s2 + $0x20] sm:$0xff]  ;;  %v696_v44 = vld [vmem:[%s2084_s2 + $0x38] sm:$0xff] }
 0x172   :  { %1445 = vmatpush1.bf16.msra.mxu0 %v1444_v43  ;;  %1489 = vmatpush1.bf16.msra.mxu1 %v1444_v43  ;;  %v464_v48 = vpop.permute.xlu1 %463  ;;  %v742_v49 = vld [vmem:[#allocation2 + $0x28] sm:$0xff]  ;;  %v709_v43 = vld [vmem:[%s2084_s2 + $0xa0] sm:$0xff] }
 0x173   :  { %486 = vst.msk [vmem:[#allocation2 + $0x48] sm:$0xff] %vm288_vm3, %v464_v48  ;;  %1446 = vmatprep.subr.bf16.mxu0 %v1505_v42  ;;  %1478 = vmatprep.subr.bf16.mxu1 %v1505_v42  ;;  %v1447_v50 = vpack.c.bf16 %v742_v49, %v741_v45  ;;  %v466_v51 = vpop.permute.xlu0 %465  ;;  %v743_v52 = vld [vmem:[#allocation2 + $0x30] sm:$0xff]  ;;  %v712_v45 = vld [vmem:[%s2084_s2 + $0xb8] sm:$0xff]  ;;  %v698_v48 = vld [vmem:[%s2084_s2 + $0x48] sm:$0xff] }
 0x174   :  { %487 = vst.msk [vmem:[#allocation2 + $0x50] sm:$0xff] %vm288_vm3, %v466_v51  ;;  %v714_v49 = vld [vmem:[%s2084_s2 + $0xc8] sm:$0xff]  ;;  %v713_v51 = vld [vmem:[%s2084_s2 + $0xc0] sm:$0xff] }
 0x176   :  { %1448 = vmatpush1.bf16.msra.mxu0 %v1447_v50  ;;  %1490 = vmatpush1.bf16.msra.mxu1 %v1447_v50  ;;  %v468_v55 = vpop.permute.xlu1 %467  ;;  %v744_v56 = vld [vmem:[#allocation2 + $0x38] sm:$0xff]  ;;  %v697_v50 = vld [vmem:[%s2084_s2 + $0x40] sm:$0xff] }
 0x177   :  { %488 = vst.msk [vmem:[#allocation2 + $0x58] sm:$0xff] %vm288_vm3, %v468_v55  ;;  %1449 = vmatprep.subr.bf16.mxu0 %v1505_v42  ;;  %1479 = vmatprep.subr.bf16.mxu1 %v1505_v42  ;;  %v1450_v57 = vpack.c.bf16 %v744_v56, %v743_v52  ;;  %v470_v58 = vpop.permute.xlu0 %469  ;;  %v745_v59 = vld [vmem:[#allocation2 + $0x40] sm:$0xff]  ;;  %v700_v52 = vld [vmem:[%s2084_s2 + $0x58] sm:$0xff]  ;;  %v715_v55 = vld [vmem:[%s2084_s2 + $0xd0] sm:$0xff] }
 0x178   :  { %489 = vst.msk [vmem:[#allocation2 + $0x60] sm:$0xff] %vm288_vm3, %v470_v58  ;;  %v702_v56 = vld [vmem:[%s2084_s2 + $0x68] sm:$0xff]  ;;  %v701_v58 = vld [vmem:[%s2084_s2 + $0x60] sm:$0xff] }
 0x17a   :  { %v472_v62 = vpop.permute.xlu1 %471  ;;  %1451 = vmatpush1.bf16.msra.mxu0 %v1450_v57  ;;  %1491 = vmatpush1.bf16.msra.mxu1 %v1450_v57  ;;  %v746_v63 = vld [vmem:[#allocation2 + $0x48] sm:$0xff] }
 0x17b   :  { %490 = vst.msk [vmem:[#allocation2 + $0x68] sm:$0xff] %vm288_vm3, %v472_v62  ;;  %1452 = vmatprep.subr.bf16.mxu0 %v1505_v42  ;;  %1480 = vmatprep.subr.bf16.mxu1 %v1505_v42  ;;  %v1453_v0 = vpack.c.bf16 %v746_v63, %v745_v59  ;;  %v474_v1 = vpop.permute.xlu0 %473  ;;  %v747_v2 = vld [vmem:[#allocation2 + $0x50] sm:$0xff]  ;;  %v718_v57 = vld [vmem:[%s2084_s2 + $0xe8] sm:$0xff]  ;;  %v717_v59 = vld [vmem:[%s2084_s2 + $0xe0] sm:$0xff] }
 0x17c   :  { %491 = vst.msk [vmem:[#allocation2 + $0x70] sm:$0xff] %vm288_vm3, %v474_v1  ;;  %v703_v62 = vld [vmem:[%s2084_s2 + $0x70] sm:$0xff]  ;;  %v721_v1 = vld [vmem:[%s2084_s2 + $0x100] sm:$0xff] }
 0x17d   :  { %v719_v63 = vld [vmem:[%s2084_s2 + $0xf0] sm:$0xff] }
 0x17e   :  { %v476_v5 = vpop.permute.xlu1 %475  ;;  %1454 = vmatpush1.bf16.msra.mxu0 %v1453_v0  ;;  %1492 = vmatpush1.bf16.msra.mxu1 %v1453_v0  ;;  %v748_v6 = vld [vmem:[#allocation2 + $0x58] sm:$0xff]  ;;  %v722_v0 = vld [vmem:[%s2084_s2 + $0x108] sm:$0xff] }
 0x17f   :  { %492 = vst.msk [vmem:[#allocation2 + $0x78] sm:$0xff] %vm288_vm3, %v476_v5  ;;  %1455 = vmatprep.subr.bf16.mxu0 %v1505_v42  ;;  %1481 = vmatprep.subr.bf16.mxu1 %v1505_v42  ;;  %v1456_v7 = vpack.c.bf16 %v748_v6, %v747_v2  ;;  %v658_v8 = vpop.permute.xlu0 %657  ;;  %v749_v9 = vld [vmem:[#allocation2 + $0x60] sm:$0xff]  ;;  %v724_v2 = vld [vmem:[%s2084_s2 + $0x118] sm:$0xff] }
 0x180   :  { %681 = vst.msk [vmem:[#allocation2 + $0x80] sm:$0xff] %vm288_vm3, %v658_v8  ;;  %v725_v5 = vld [vmem:[%s2084_s2 + $0x120] sm:$0xff]  ;;  %v728_v6 = vld [vmem:[%s2084_s2 + $0x138] sm:$0xff]  ;;  %v730_v8 = vld [vmem:[%s2084_s2 + $0x148] sm:$0xff] }
 0x182   :  { %1457 = vmatpush1.bf16.msra.mxu0 %v1456_v7  ;;  %1493 = vmatpush1.bf16.msra.mxu1 %v1456_v7  ;;  %v660_v10 = vpop.permute.xlu1 %659  ;;  %v750_v11 = vld [vmem:[#allocation2 + $0x68] sm:$0xff]  ;;  %v727_v7 = vld [vmem:[%s2084_s2 + $0x130] sm:$0xff] }
 0x183   :  { %682 = vst.msk [vmem:[#allocation2 + $0x88] sm:$0xff] %vm288_vm3, %v660_v10  ;;  %1458 = vmatprep.subr.bf16.mxu0 %v1505_v42  ;;  %1482 = vmatprep.subr.bf16.mxu1 %v1505_v42  ;;  %v1459_v12 = vpack.c.bf16 %v750_v11, %v749_v9  ;;  %v662_v13 = vpop.permute.xlu0 %661  ;;  %v751_v14 = vld [vmem:[#allocation2 + $0x70] sm:$0xff]  ;;  %v729_v9 = vld [vmem:[%s2084_s2 + $0x140] sm:$0xff]  ;;  %v732_v10 = vld [vmem:[%s2084_s2 + $0x158] sm:$0xff] }
 0x184   :  { %683 = vst.msk [vmem:[#allocation2 + $0x90] sm:$0xff] %vm288_vm3, %v662_v13  ;;  %v731_v11 = vld [vmem:[%s2084_s2 + $0x150] sm:$0xff]  ;;  %v733_v13 = vld [vmem:[%s2084_s2 + $0x160] sm:$0xff] }
 0x186   :  { %1460 = vmatpush1.bf16.msra.mxu0 %v1459_v12  ;;  %1494 = vmatpush1.bf16.msra.mxu1 %v1459_v12  ;;  %v664_v15 = vpop.permute.xlu1 %663  ;;  %v752_v16 = vld [vmem:[#allocation2 + $0x78] sm:$0xff]  ;;  %v734_v12 = vld [vmem:[%s2084_s2 + $0x168] sm:$0xff] }
 0x187   :  { %684 = vst.msk [vmem:[#allocation2 + $0x98] sm:$0xff] %vm288_vm3, %v664_v15  ;;  %1461 = vmatprep.subr.bf16.mxu0 %v1505_v42  ;;  %1483 = vmatprep.subr.bf16.mxu1 %v1505_v42  ;;  %v1462_v17 = vpack.c.bf16 %v752_v16, %v751_v14  ;;  %v666_v18 = vpop.permute.xlu0 %665  ;;  %v753_v19 = vld [vmem:[#allocation2 + $0x80] sm:$0xff]  ;;  %v736_v14 = vld [vmem:[%s2084_s2 + $0x178] sm:$0xff]  ;;  %v735_v15 = vld [vmem:[%s2084_s2 + $0x170] sm:$0xff] }
 0x188   :  { %685 = vst.msk [vmem:[#allocation2 + $0xa0] sm:$0xff] %vm288_vm3, %v666_v18 }
 0x18a   :  { %1463 = vmatpush1.bf16.msra.mxu0 %v1462_v17  ;;  %1495 = vmatpush1.bf16.msra.mxu1 %v1462_v17  ;;  %v668_v20 = vpop.permute.xlu1 %667  ;;  %v754_v21 = vld [vmem:[#allocation2 + $0x88] sm:$0xff] }
 0x18b   :  { %686 = vst.msk [vmem:[#allocation2 + $0xa8] sm:$0xff] %vm288_vm3, %v668_v20  ;;  %1464 = vmatprep.subr.bf16.mxu0 %v1505_v42  ;;  %1484 = vmatprep.subr.bf16.mxu1 %v1505_v42  ;;  %v1465_v22 = vpack.c.bf16 %v754_v21, %v753_v19  ;;  %v670_v23 = vpop.permute.xlu0 %669  ;;  %v755_v24 = vld [vmem:[#allocation2 + $0x90] sm:$0xff] }
 0x18c   :  { %687 = vst.msk [vmem:[#allocation2 + $0xb0] sm:$0xff] %vm288_vm3, %v670_v23 }
 0x18e   :  { %1466 = vmatpush1.bf16.msra.mxu0 %v1465_v22  ;;  %1496 = vmatpush1.bf16.msra.mxu1 %v1465_v22  ;;  %v672_v25 = vpop.permute.xlu1 %671  ;;  %v756_v26 = vld [vmem:[#allocation2 + $0x98] sm:$0xff] }
 0x18f   :  { %688 = vst.msk [vmem:[#allocation2 + $0xb8] sm:$0xff] %vm288_vm3, %v672_v25  ;;  %1467 = vmatprep.subr.bf16.mxu0 %v1505_v42  ;;  %1485 = vmatprep.subr.bf16.mxu1 %v1505_v42  ;;  %v1468_v27 = vpack.c.bf16 %v756_v26, %v755_v24  ;;  %v757_v28 = vld [vmem:[#allocation2 + $0xa0] sm:$0xff] }
 0x192   :  { %1469 = vmatpush1.bf16.msra.mxu0 %v1468_v27  ;;  %1497 = vmatpush1.bf16.msra.mxu1 %v1468_v27  ;;  %v758_v29 = vld [vmem:[#allocation2 + $0xa8] sm:$0xff] }
 0x193   :  { %1470 = vmatprep.subr.bf16.mxu0 %v1505_v42  ;;  %1486 = vmatprep.subr.bf16.mxu1 %v1505_v42  ;;  %v1471_v30 = vpack.c.bf16 %v758_v29, %v757_v28  ;;  %v759_v31 = vld [vmem:[#allocation2 + $0xb0] sm:$0xff] }
 0x196   :  { %1472 = vmatpush1.bf16.msra.mxu0 %v1471_v30  ;;  %1498 = vmatpush1.bf16.msra.mxu1 %v1471_v30  ;;  %v760_v32 = vld [vmem:[#allocation2 + $0xb8] sm:$0xff] }
 0x197   :  { %1473 = vmatprep.subr.bf16.mxu0 %v1505_v42  ;;  %1487 = vmatprep.subr.bf16.mxu1 %v1505_v42  ;;  %v1474_v33 = vpack.c.bf16 %v760_v32, %v759_v31  ;;  %v691_v42 = vld [vmem:[%s2084_s2 + $0x10] sm:$0xff] }
 0x19a   :  { %1475 = vmatpush1.bf16.msra.mxu0 %v1474_v33  ;;  %1499 = vmatpush1.bf16.msra.mxu1 %v1474_v33 }
 0x19c   :  { %v788_v17 = vpop.permute.xlu0 %787 }
 0x19d   :  { %1043 = vmatmul.mubr.f32.vlgmr.msra.gmra.mrb[32].mxu0 %v689_v34  ;;  %1083 = vmatmul.mubr.f32.vlgmr.msra.gmra.mrb[16].mxu1 %v705_v35 }
 0x19e   :  { %1267 = vmatprep.mubr.msk.f32.mxu0 %vm905_vm2, %v692_v36  ;;  %1275 = vmatprep.mubr.msk.f32.mxu1 %vm905_vm2, %v708_v37 }
 0x19f   :  { %v793_v16 = vpop.permute.xlu1 %792 }
 0x1a0   :  { %v803_v19 = vpop.permute.xlu0 %802 }
 0x1a1   :  { %1048 = vmatmul.mubr.f32.gmra.mrb[34].mxu0 %v691_v42  ;;  %1088 = vmatmul.mubr.f32.gmra.mrb[18].mxu1 %v707_v38 }
 0x1a2   :  { %1268 = vmatprep.mubr.msk.f32.mxu0 %vm905_vm2, %v694_v39  ;;  %1276 = vmatprep.mubr.msk.f32.mxu1 %vm905_vm2, %v710_v40 }
 0x1a3   :  { %v798_v18 = vpop.permute.xlu1 %797 }
 0x1a4   :  { %v813_v21 = vpop.permute.xlu0 %812 }
 0x1a5   :  { %1053 = vmatmul.mubr.f32.gmra.mrb[36].mxu0 %v693_v41  ;;  %1093 = vmatmul.mubr.f32.gmra.mrb[20].mxu1 %v709_v43 }
 0x1a6   :  { %1269 = vmatprep.mubr.msk.f32.mxu0 %vm905_vm2, %v696_v44  ;;  %1277 = vmatprep.mubr.msk.f32.mxu1 %vm905_vm2, %v712_v45 }
 0x1a7   :  { %v808_v20 = vpop.permute.xlu1 %807 }
 0x1a8   :  { %v1983_v23 = vpop.permute.xlu0 %822 }
 0x1a9   :  { %1058 = vmatmul.mubr.f32.gmra.mrb[38].mxu0 %v695_v46  ;;  %1098 = vmatmul.mubr.f32.gmra.mrb[22].mxu1 %v711_v47 }
 0x1aa   :  { %1270 = vmatprep.mubr.msk.f32.mxu0 %vm905_vm2, %v698_v48  ;;  %1278 = vmatprep.mubr.msk.f32.mxu1 %vm905_vm2, %v714_v49 }
 0x1ab   :  { %v818_v22 = vpop.permute.xlu1 %817 }
 0x1ac   :  { %v833_v31 = vpop.permute.xlu0 %832 }
 0x1ad   :  { %1063 = vmatmul.mubr.f32.gmra.mrb[40].mxu0 %v697_v50  ;;  %1103 = vmatmul.mubr.f32.gmra.mrb[24].mxu1 %v713_v51 }
 0x1ae   :  { %1271 = vmatprep.mubr.msk.f32.mxu0 %vm905_vm2, %v700_v52  ;;  %1279 = vmatprep.mubr.msk.f32.mxu1 %vm905_vm2, %v716_v53 }
 0x1af   :  { %v828_v24 = vpop.permute.xlu1 %827 }
 0x1b0   :  { %v843_v45 = vpop.permute.xlu0 %842 }
 0x1b1   :  { %1068 = vmatmul.mubr.f32.gmra.mrb[42].mxu0 %v699_v54  ;;  %1108 = vmatmul.mubr.f32.gmra.mrb[26].mxu1 %v715_v55 }
 0x1b2   :  { %1272 = vmatprep.mubr.msk.f32.mxu0 %vm905_vm2, %v702_v56  ;;  %1280 = vmatprep.mubr.msk.f32.mxu1 %vm905_vm2, %v718_v57 }
 0x1b3   :  { %v838_v42 = vpop.permute.xlu1 %837 }
 0x1b5   :  { %1073 = vmatmul.mubr.f32.gmra.mrb[44].mxu0 %v701_v58  ;;  %1113 = vmatmul.mubr.f32.gmra.mrb[28].mxu1 %v717_v59  ;;  %v853_v59 = vpop.permute.xlu0 %852 }
 0x1b6   :  { %1273 = vmatprep.mubr.msk.f32.mxu0 %vm905_vm2, %v704_v60  ;;  %1281 = vmatprep.mubr.msk.f32.mxu1 %vm905_vm2, %v720_v61 }
 0x1b7   :  { %v848_v52 = vpop.permute.xlu1 %847 }
 0x1b9   :  { %1078 = vmatmul.mubr.f32.gmra.mrb[46].mxu0 %v703_v62  ;;  %1118 = vmatmul.mubr.f32.gmra.mrb[30].mxu1 %v719_v63 }
 0x1ba   :  { %1282 = vmatprep.mubr.msk.f32.mxu1 %vm905_vm2, %v722_v0 }
 0x1bd   :  { %1123 = vmatmul.mubr.f32.gmra.mrb[32].mxu1 %v721_v1 }
 0x1be   :  { %1283 = vmatprep.mubr.msk.f32.mxu1 %vm905_vm2, %v724_v2  ;;  %v858_v2 = vpop.permute.xlu1 %857 }
 0x1c1   :  { %1128 = vmatmul.mubr.f32.gmra.mrb[34].mxu1 %v723_v3 }
 0x1c2   :  { %1284 = vmatprep.mubr.msk.f32.mxu1 %vm905_vm2, %v726_v4 }
 0x1c5   :  { %1133 = vmatmul.mubr.f32.gmra.mrb[36].mxu1 %v725_v5 }
 0x1c6   :  { %1285 = vmatprep.mubr.msk.f32.mxu1 %vm905_vm2, %v728_v6 }
 0x1c9   :  { %1138 = vmatmul.mubr.f32.gmra.mrb[38].mxu1 %v727_v7 }
 0x1ca   :  { %1286 = vmatprep.mubr.msk.f32.mxu1 %vm905_vm2, %v730_v8 }
 0x1cd   :  { %1143 = vmatmul.mubr.f32.gmra.mrb[40].mxu1 %v729_v9  ;;  %v863_v9 = vpop.permute.xlu0 %862 }
 0x1ce   :  { %1287 = vmatprep.mubr.msk.f32.mxu1 %vm905_vm2, %v732_v10 }
 0x1d1   :  { %1148 = vmatmul.mubr.f32.gmra.mrb[42].mxu1 %v731_v11 }
 0x1d2   :  { %1288 = vmatprep.mubr.msk.f32.mxu1 %vm905_vm2, %v734_v12 }
 0x1d5   :  { %1153 = vmatmul.mubr.f32.gmra.mrb[44].mxu1 %v733_v13 }
 0x1d6   :  { %1289 = vmatprep.mubr.msk.f32.mxu1 %vm905_vm2, %v736_v14 }
 0x1d9   :  { %1158 = vmatmul.mubr.f32.gmra.mrb[46].mxu1 %v735_v15 }
 0x270   :  { %v1084_v25 = vpop.f32.mrb[16].mxu1  ;;  %v1044_v26 = vpop.f32.mrb[32].mxu0 }
 0x271   :  { %v1085_v27 = vadd.f32 %v1084_v25, %v828_v24  ;;  %v1086_v28 = vpop.f32.mrb[17].mxu1  ;;  %v1045_v29 = vadd.f32 %v1044_v26, %v788_v17  ;;  %v1046_v30 = vpop.f32.mrb[33].mxu0 }
 0x273   :  { %1172 = vst.msk [vmem:[%s2086_s4 + $0x40] sm:$0xff] %vm1163_vm4, %v1085_v27  ;;  %1164 = vst.msk [vmem:[%s2086_s4] sm:$0xff] %vm1163_vm4, %v1045_v29 }
 0x274   :  { %v1089_v32 = vpop.f32.mrb[18].mxu1  ;;  %v1049_v33 = vpop.f32.mrb[34].mxu0 }
 0x275   :  { %v1090_v34 = vadd.f32 %v1089_v32, %v833_v31  ;;  %v1091_v35 = vpop.f32.mrb[19].mxu1  ;;  %v1050_v36 = vadd.f32 %v1049_v33, %v793_v16  ;;  %v1051_v37 = vpop.f32.mrb[35].mxu0 }
 0x276   :  { %v868_v16 = vpop.permute.xlu1 %867 }
 0x277   :  { %1173 = vst.msk [vmem:[%s2086_s4 + $0x48] sm:$0xff] %vm1163_vm4, %v1090_v34  ;;  %1165 = vst.msk [vmem:[%s2086_s4 + $0x8] sm:$0xff] %vm1163_vm4, %v1050_v36 }
 0x278   :  { %v1094_v38 = vpop.f32.mrb[20].mxu1  ;;  %v1054_v39 = vpop.f32.mrb[36].mxu0 }
 0x279   :  { %v1095_v40 = vadd.f32 %v1094_v38, %v838_v42  ;;  %v1096_v41 = vpop.f32.mrb[21].mxu1  ;;  %v1055_v43 = vadd.f32 %v1054_v39, %v798_v18  ;;  %v1056_v44 = vpop.f32.mrb[37].mxu0 }
 0x27a   :  { %v878_v24 = vpop.permute.xlu1 %877 }
 0x27b   :  { %1174 = vst.msk [vmem:[%s2086_s4 + $0x50] sm:$0xff] %vm1163_vm4, %v1095_v40  ;;  %1166 = vst.msk [vmem:[%s2086_s4 + $0x10] sm:$0xff] %vm1163_vm4, %v1055_v43 }
 0x27c   :  { %v1099_v46 = vpop.f32.mrb[22].mxu1  ;;  %v1059_v47 = vpop.f32.mrb[38].mxu0 }
 0x27d   :  { %v1100_v48 = vadd.f32 %v1099_v46, %v843_v45  ;;  %v1101_v49 = vpop.f32.mrb[23].mxu1  ;;  %v1060_v50 = vadd.f32 %v1059_v47, %v803_v19  ;;  %v1061_v51 = vpop.f32.mrb[39].mxu0 }
 0x27e   :  { %v888_v32 = vpop.permute.xlu1 %887 }
 0x27f   :  { %1175 = vst.msk [vmem:[%s2086_s4 + $0x58] sm:$0xff] %vm1163_vm4, %v1100_v48  ;;  %1167 = vst.msk [vmem:[%s2086_s4 + $0x18] sm:$0xff] %vm1163_vm4, %v1060_v50 }
 0x280   :  { %v1064_v53 = vpop.f32.mrb[40].mxu0  ;;  %v1104_v54 = vpop.f32.mrb[24].mxu1 }
 0x281   :  { %v1065_v55 = vadd.f32 %v1064_v53, %v808_v20  ;;  %v1105_v56 = vadd.f32 %v1104_v54, %v848_v52  ;;  %v1106_v57 = vpop.f32.mrb[25].mxu1  ;;  %v1066_v58 = vpop.f32.mrb[41].mxu0 }
 0x282   :  { %v873_v20 = vpop.permute.xlu0 %872  ;;  %v898_v39 = vpop.permute.xlu1 %897 }
 0x283   :  { %1168 = vst.msk [vmem:[%s2086_s4 + $0x20] sm:$0xff] %vm1163_vm4, %v1065_v55  ;;  %1176 = vst.msk [vmem:[%s2086_s4 + $0x60] sm:$0xff] %vm1163_vm4, %v1105_v56 }
 0x284   :  { %v1069_v60 = vpop.f32.mrb[42].mxu0  ;;  %v1109_v61 = vpop.f32.mrb[26].mxu1 }
 0x285   :  { %v1070_v62 = vadd.f32 %v1069_v60, %v813_v21  ;;  %v1110_v63 = vadd.f32 %v1109_v61, %v853_v59  ;;  %v1111_v0 = vpop.f32.mrb[27].mxu1  ;;  %v1071_v1 = vpop.f32.mrb[43].mxu0 }
 0x286   :  { %v883_v28 = vpop.permute.xlu0 %882 }
 0x287   :  { %1169 = vst.msk [vmem:[%s2086_s4 + $0x28] sm:$0xff] %vm1163_vm4, %v1070_v62  ;;  %1177 = vst.msk [vmem:[%s2086_s4 + $0x68] sm:$0xff] %vm1163_vm4, %v1110_v63 }
 0x288   :  { %v1074_v3 = vpop.f32.mrb[44].mxu0  ;;  %v1114_v4 = vpop.f32.mrb[28].mxu1 }
 0x289   :  { %v1075_v5 = vadd.f32 %v1074_v3, %v818_v22  ;;  %v1115_v6 = vadd.f32 %v1114_v4, %v858_v2  ;;  %v1116_v7 = vpop.f32.mrb[29].mxu1  ;;  %v1076_v8 = vpop.f32.mrb[45].mxu0 }
 0x28a   :  { %v893_v36 = vpop.permute.xlu0 %892 }
 0x28b   :  { %1170 = vst.msk [vmem:[%s2086_s4 + $0x30] sm:$0xff] %vm1163_vm4, %v1075_v5  ;;  %1178 = vst.msk [vmem:[%s2086_s4 + $0x70] sm:$0xff] %vm1163_vm4, %v1115_v6 }
 0x28c   :  { %v1079_v10 = vpop.f32.mrb[46].mxu0  ;;  %v1119_v11 = vpop.f32.mrb[30].mxu1 }
 0x28d   :  { %v1080_v12 = vadd.f32 %v1079_v10, %v1983_v23  ;;  %v1120_v13 = vadd.f32 %v1119_v11, %v863_v9  ;;  %v1121_v14 = vpop.f32.mrb[31].mxu1  ;;  %v1081_v15 = vpop.f32.mrb[47].mxu0 }
 0x28e   :  { %v903_v44 = vpop.permute.xlu0 %902 }
 0x28f   :  { %1171 = vst.msk [vmem:[%s2086_s4 + $0x38] sm:$0xff] %vm1163_vm4, %v1080_v12  ;;  %1179 = vst.msk [vmem:[%s2086_s4 + $0x78] sm:$0xff] %vm1163_vm4, %v1120_v13 }
 0x290   :  { %v1124_v17 = vpop.f32.mrb[32].mxu1 }
 0x291   :  { %v1125_v18 = vadd.f32 %v1124_v17, %v868_v16  ;;  %v1126_v19 = vpop.f32.mrb[33].mxu1 }
 0x293   :  { %1180 = vst.msk [vmem:[%s2086_s4 + $0x80] sm:$0xff] %vm1163_vm4, %v1125_v18 }
 0x294   :  { %v1129_v21 = vpop.f32.mrb[34].mxu1 }
 0x295   :  { %v1130_v22 = vadd.f32 %v1129_v21, %v873_v20  ;;  %v1131_v23 = vpop.f32.mrb[35].mxu1 }
 0x297   :  { %1181 = vst.msk [vmem:[%s2086_s4 + $0x88] sm:$0xff] %vm1163_vm4, %v1130_v22 }
 0x298   :  { %v1134_v25 = vpop.f32.mrb[36].mxu1 }
 0x299   :  { %v1135_v26 = vadd.f32 %v1134_v25, %v878_v24  ;;  %v1136_v27 = vpop.f32.mrb[37].mxu1 }
 0x29b   :  { %1182 = vst.msk [vmem:[%s2086_s4 + $0x90] sm:$0xff] %vm1163_vm4, %v1135_v26 }
 0x29c   :  { %v1139_v29 = vpop.f32.mrb[38].mxu1 }
 0x29d   :  { %v1140_v30 = vadd.f32 %v1139_v29, %v883_v28  ;;  %v1141_v31 = vpop.f32.mrb[39].mxu1 }
 0x29f   :  { %1183 = vst.msk [vmem:[%s2086_s4 + $0x98] sm:$0xff] %vm1163_vm4, %v1140_v30 }
 0x2a0   :  { %v1144_v33 = vpop.f32.mrb[40].mxu1 }
 0x2a1   :  { %v1145_v34 = vadd.f32 %v1144_v33, %v888_v32  ;;  %v1146_v35 = vpop.f32.mrb[41].mxu1 }
 0x2a3   :  { %1184 = vst.msk [vmem:[%s2086_s4 + $0xa0] sm:$0xff] %vm1163_vm4, %v1145_v34 }
 0x2a4   :  { %v1149_v37 = vpop.f32.mrb[42].mxu1 }
 0x2a5   :  { %v1150_v42 = vadd.f32 %v1149_v37, %v893_v36  ;;  %v1151_v38 = vpop.f32.mrb[43].mxu1 }
 0x2a7   :  { %1185 = vst.msk [vmem:[%s2086_s4 + $0xa8] sm:$0xff] %vm1163_vm4, %v1150_v42 }
 0x2a8   :  { %v1154_v40 = vpop.f32.mrb[44].mxu1 }
 0x2a9   :  { %v1155_v41 = vadd.f32 %v1154_v40, %v898_v39  ;;  %v1156_v43 = vpop.f32.mrb[45].mxu1 }
 0x2ab   :  { %1186 = vst.msk [vmem:[%s2086_s4 + $0xb0] sm:$0xff] %vm1163_vm4, %v1155_v41 }
 0x2ac   :  { %v1159_v45 = vpop.f32.mrb[46].mxu1 }
 0x2ad   :  { %v1160_v46 = vadd.f32 %v1159_v45, %v903_v44  ;;  %v1161_v47 = vpop.f32.mrb[47].mxu1 }
 0x2af   :  { %1187 = vst.msk [vmem:[%s2086_s4 + $0xb8] sm:$0xff] %vm1163_vm4, %v1160_v46 }

</bundles_post_ra>
